<compile_context>
chip_gen: v6e
topology: v6e:2x2x1
jax: 0.10.0
libtpu: 0.0.40
codegen_flags: <defaults>
</compile_context>

<pallas_src>
import functools

import jax
import jax.numpy as jnp
from jax.experimental import pallas as pl
from jax.experimental.pallas import tpu as pltpu


# ----------------------------------------------------------------------------
# Pallas kernels
# ----------------------------------------------------------------------------
def _conv_mm_kernel(*refs, relu, has_res):
    """Single-shot matmul (full-K block) with fused bias (+res)(+ReLU) epilogue.

    A/B operands are bf16 (MXU-native); accumulation + epilogue are f32.
    """
    if has_res:
        a_ref, b_ref, c_ref, r_ref, o_ref = refs
    else:
        a_ref, b_ref, c_ref, o_ref = refs
        r_ref = None

    y = jnp.dot(a_ref[...], b_ref[...], preferred_element_type=jnp.float32)
    y = y + c_ref[...]                      # folded-BN bias (f32)
    if r_ref is not None:
        y = y + r_ref[...].astype(jnp.float32)
    if relu:
        y = jnp.maximum(y, 0.0)
    o_ref[...] = y.astype(o_ref.dtype)


def _maxpool_kernel(x_ref, o_ref):
    # x_ref: (9, TR, L) stacked shifted windows -> max over window axis.
    o_ref[...] = jnp.max(x_ref[...], axis=0)


# ----------------------------------------------------------------------------
# Wrappers
# ----------------------------------------------------------------------------
def _round_up(v, m):
    return (v + m - 1) // m * m


def _pad_to(x, mult, axis):
    pad = (-x.shape[axis]) % mult
    if pad == 0:
        return x
    widths = [(0, 0)] * x.ndim
    widths[axis] = (0, pad)
    return jnp.pad(x, widths)


def matmul_bias_act(patches, w, bias, residual=None, relu=True,
                    out_dtype=jnp.bfloat16):
    """out = act((patches @ w) + bias [+ residual]) via a single Pallas matmul.

    `w` already has the BN scale folded in; `bias` is the folded BN bias.
    """
    M, K = patches.shape
    _, N = w.shape

    # Adaptive tiles: never pad a tiny M up to 128; prefer TN=128 when there is
    # only one M tile so v7x's two TensorCores both get a tile.
    TM = min(128, _round_up(M, 8))
    m_tiles = pl.cdiv(M, TM)
    TN = 256 if (N >= 256 and m_tiles >= 2) else 128

    a = _pad_to(patches.astype(jnp.bfloat16), TM, 0)          # (Mp, K) bf16
    b = _pad_to(w.astype(jnp.bfloat16), TN, 1)                 # (K, Np) bf16
    c = _pad_to(bias.reshape(1, N).astype(jnp.float32), TN, 1)  # (1, Np) f32
    Mp = a.shape[0]
    Np = b.shape[1]

    in_specs = [
        pl.BlockSpec((TM, K), lambda i, j: (i, 0)),   # A panel, full K
        pl.BlockSpec((K, TN), lambda i, j: (0, j)),   # B panel, full K
        pl.BlockSpec((1, TN), lambda i, j: (0, j)),   # folded-BN bias
    ]
    args = [a, b, c]
    has_res = residual is not None
    if has_res:
        r = _pad_to(_pad_to(residual, TM, 0), TN, 1)
        in_specs.append(pl.BlockSpec((TM, TN), lambda i, j: (i, j)))
        args.append(r)

    kernel = functools.partial(_conv_mm_kernel, relu=relu, has_res=has_res)
    out = pl.pallas_call(
        kernel,
        out_shape=jax.ShapeDtypeStruct((Mp, Np), out_dtype),
        grid_spec=pltpu.PrefetchScalarGridSpec(
            num_scalar_prefetch=0,
            grid=(Mp // TM, Np // TN),
            in_specs=in_specs,
            out_specs=pl.BlockSpec((TM, TN), lambda i, j: (i, j)),
        ),
        compiler_params=pltpu.CompilerParams(
            dimension_semantics=("parallel", "parallel"),
            # Largest panels (K=2304, bf16, double-buffered) are ~2.5 MiB;
            # 32 MiB is safe on all generations (v7x physical VMEM is 64 MiB).
            vmem_limit_bytes=32 * 1024 * 1024),
    )(*args)
    if Mp != M or Np != N:
        out = out[:M, :N]
    return out


def _im2col(x, kh, kw, stride, pad):
    n, h, w, cin = x.shape
    xp = jnp.pad(x, ((0, 0), (pad, pad), (pad, pad), (0, 0)))
    ho = (h + 2 * pad - kh) // stride + 1
    wo = (w + 2 * pad - kw) // stride + 1
    cols = []
    for di in range(kh):
        for dj in range(kw):
            cols.append(xp[:, di:di + stride * ho:stride,
                           dj:dj + stride * wo:stride, :])
    patches = jnp.concatenate(cols, axis=-1)  # (n, ho, wo, kh*kw*cin)
    return patches.reshape(n * ho * wo, kh * kw * cin), ho, wo


def conv_bn(x, w, bn, stride, pad, relu=True, residual=None,
            out_dtype=jnp.bfloat16):
    """Conv2d (no bias) + eval-mode BatchNorm (+ residual) (+ ReLU)."""
    cout, cin, kh, kw = w.shape
    n = x.shape[0]
    patches, ho, wo = _im2col(x, kh, kw, stride, pad)
    gamma, beta, mean, var = bn
    scale = gamma / jnp.sqrt(var + 1e-5)
    bias = beta - mean * scale
    # Fold the per-output-channel BN scale into the weight matrix (commutes
    # with the matmul) so the kernel epilogue only adds the bias.
    wm = jnp.transpose(w, (2, 3, 1, 0)).reshape(kh * kw * cin, cout)
    wm = wm * scale[None, :]
    res = residual.reshape(-1, cout) if residual is not None else None
    out = matmul_bias_act(patches, wm, bias, res, relu, out_dtype)
    return out.reshape(n, ho, wo, cout)


def maxpool_3x3_s2_p1(x):
    n, h, w, c = x.shape
    ho = (h + 2 - 3) // 2 + 1
    wo = (w + 2 - 3) // 2 + 1
    xp = jnp.pad(x, ((0, 0), (1, 1), (1, 1), (0, 0)),
                 constant_values=-jnp.inf)
    wins = []
    for di in range(3):
        for dj in range(3):
            wins.append(xp[:, di:di + 2 * ho:2, dj:dj + 2 * wo:2, :]
                        .reshape(n * ho, wo * c))
    stacked = jnp.stack(wins, axis=0)        # (9, n*ho, wo*c): lane-dense cols
    R, L = n * ho, wo * c
    TR = min(256, _round_up(R, 8))
    stacked = _pad_to(stacked, TR, 1)
    Rp = stacked.shape[1]
    out = pl.pallas_call(
        _maxpool_kernel,
        out_shape=jax.ShapeDtypeStruct((Rp, L), x.dtype),
        grid_spec=pltpu.PrefetchScalarGridSpec(
            num_scalar_prefetch=0,
            grid=(Rp // TR,),
            in_specs=[pl.BlockSpec((9, TR, L), lambda i: (0, i, 0))],
            out_specs=pl.BlockSpec((TR, L), lambda i: (i, 0)),
        ),
        compiler_params=pltpu.CompilerParams(
            dimension_semantics=("parallel",)),
    )(stacked)
    if Rp != R:
        out = out[:R]
    return out.reshape(n, ho, wo, c)


# ----------------------------------------------------------------------------
# Parameter init (deterministic synthetic weights, resnet18 shapes)
# ----------------------------------------------------------------------------
def _init_bn(key, c):
    k1, k2, k3, k4 = jax.random.split(key, 4)
    gamma = jax.random.uniform(k1, (c,), minval=0.5, maxval=1.5)
    beta = 0.1 * jax.random.normal(k2, (c,))
    mean = 0.1 * jax.random.normal(k3, (c,))
    var = jax.random.uniform(k4, (c,), minval=0.5, maxval=1.5)
    return (gamma, beta, mean, var)


def _init_conv(key, cout, cin, kh, kw):
    return 0.05 * jax.random.normal(key, (cout, cin, kh, kw), dtype=jnp.float32)


def init_resnet18_params(key):
    # TODO(synk): pretrained torchvision checkpoint loading has no in-script
    # equivalent; weights are synthetic but shape-exact.
    keys = iter(jax.random.split(key, 64))
    params = {
        'conv1': _init_conv(next(keys), 64, 3, 7, 7),
        'bn1': _init_bn(next(keys), 64),
    }
    layer_cfg = {
        'layer1': [(64, 64, 1), (64, 64, 1)],
        'layer2': [(64, 128, 2), (128, 128, 1)],
        'layer3': [(128, 256, 2), (256, 256, 1)],
    }
    for lname, blocks in layer_cfg.items():
        blist = []
        for cin, cout, stride in blocks:
            b = {
                'conv1': _init_conv(next(keys), cout, cin, 3, 3),
                'bn1': _init_bn(next(keys), cout),
                'conv2': _init_conv(next(keys), cout, cout, 3, 3),
                'bn2': _init_bn(next(keys), cout),
                'stride': stride,
            }
            if stride != 1 or cin != cout:
                b['down_conv'] = _init_conv(next(keys), cout, cin, 1, 1)
                b['down_bn'] = _init_bn(next(keys), cout)
            blist.append(b)
        params[lname] = blist
    return params


# ----------------------------------------------------------------------------
# Forward (matches torchvision BasicBlock / ResNet.forward through layer3)
# ----------------------------------------------------------------------------
def basic_block(x, bp, out_dtype=jnp.bfloat16):
    stride = bp['stride']
    if 'down_conv' in bp:
        identity = conv_bn(x, bp['down_conv'], bp['down_bn'],
                           stride=stride, pad=0, relu=False)
    else:
        identity = x
    out = conv_bn(x, bp['conv1'], bp['bn1'], stride=stride, pad=1, relu=True)
    # bn2(conv2(out)) + identity, then ReLU -- fused in the kernel epilogue.
    out = conv_bn(out, bp['conv2'], bp['bn2'], stride=1, pad=1,
                  relu=True, residual=identity, out_dtype=out_dtype)
    return out


def resnet_forward(params, x_nchw):
    # NCHW -> NHWC; intermediate activations kept in bf16 (memory-bound net),
    # final layer3 output produced in f32 by the last fused kernel.
    x = jnp.transpose(x_nchw, (0, 2, 3, 1)).astype(jnp.bfloat16)
    x = conv_bn(x, params['conv1'], params['bn1'], stride=2, pad=3, relu=True)
    x = maxpool_3x3_s2_p1(x)
    for lname in ('layer1', 'layer2', 'layer3'):
        blocks = params[lname]
        for bi, bp in enumerate(blocks):
            last = (lname == 'layer3') and (bi == len(blocks) - 1)
            x = basic_block(
                x, bp, out_dtype=jnp.float32 if last else jnp.bfloat16)
    return jnp.transpose(x, (0, 3, 1, 2))  # NHWC -> NCHW (PyTorch convention)


if __name__ == "__main__":
    key = jax.random.PRNGKey(0)
    kp, kx = jax.random.split(key)
    params = init_resnet18_params(kp)

    # Small NCHW input: batch=2, 3 channels (conv1 expects 3), 32x32 spatial.
    x = jax.random.normal(kx, (2, 3, 32, 32), dtype=jnp.float32)

    out = resnet_forward(params, x)
    out = jax.block_until_ready(out)

    # 32 -> conv1/2 -> 16 -> maxpool/2 -> 8 -> layer1 -> 8 -> layer2 -> 4 -> layer3 -> 2
    assert out.shape == (2, 256, 2, 2), out.shape
    assert out.dtype == jnp.float32, out.dtype
    assert bool(jnp.all(jnp.isfinite(out)))
    print("KERNEL_OK")
</pallas_src>

<mosaic_0001>
module attributes {stable_mosaic.version = 11 : i64} {
  func.func @_conv_mm_kernel(%arg0: i32, %arg1: i32, %arg2: memref<128x147xbf16, #tpu.memory_space<vmem>>, %arg3: memref<147x128xbf16, #tpu.memory_space<vmem>>, %arg4: memref<1x128xf32, #tpu.memory_space<vmem>>, %arg5: memref<128x128xbf16, #tpu.memory_space<vmem>>) attributes {dimension_semantics = [#tpu.dimension_semantics<parallel>, #tpu.dimension_semantics<parallel>], iteration_bounds = array<i64: 4, 1>, scalar_prefetch = 0 : i64, scratch_operands = 0 : i64, tpu.core_type = #tpu.core_type<tc>, window_params = [{transform_indices = @transform_0, window_bounds = array<i64: 128, 147>}, {transform_indices = @transform_1, window_bounds = array<i64: 147, 128>}, {transform_indices = @transform_2, window_bounds = array<i64: 1, 128>}, {transform_indices = @transform_3, window_bounds = array<i64: 128, 128>}]} {
    %c0 = arith.constant 0 : index
    %c0_0 = arith.constant 0 : index
    %0 = vector.load %arg2[%c0, %c0_0] : memref<128x147xbf16, #tpu.memory_space<vmem>>, vector<128x147xbf16>
    %c0_1 = arith.constant 0 : index
    %c0_2 = arith.constant 0 : index
    %1 = vector.load %arg3[%c0_1, %c0_2] : memref<147x128xbf16, #tpu.memory_space<vmem>>, vector<147x128xbf16>
    %cst = arith.constant dense<0.000000e+00> : vector<128x128xf32>
    %2 = tpu.matmul %0, %1, %cst {dimension_numbers = #tpu.dot_dimension_numbers<[1], [0], [0], [1], [0, 0, 1, 1], [], []>} : vector<128x147xbf16>, vector<147x128xbf16>, vector<128x128xf32> -> vector<128x128xf32>
    %c0_3 = arith.constant 0 : index
    %c0_4 = arith.constant 0 : index
    %3 = vector.load %arg4[%c0_3, %c0_4] : memref<1x128xf32, #tpu.memory_space<vmem>>, vector<1x128xf32>
    %4 = vector.broadcast %3 : vector<1x128xf32> to vector<128x128xf32>
    %5 = arith.addf %2, %4 : vector<128x128xf32>
    %cst_5 = arith.constant 0.000000e+00 : f32
    %6 = vector.broadcast %cst_5 : f32 to vector<128x128xf32>
    %7 = arith.maximumf %5, %6 : vector<128x128xf32>
    %8 = arith.truncf %7 : vector<128x128xf32> to vector<128x128xbf16>
    %c0_6 = arith.constant 0 : index
    %c0_7 = arith.constant 0 : index
    %9 = vector.load %arg5[%c0_6, %c0_7] : memref<128x128xbf16, #tpu.memory_space<vmem>>, vector<128x128xbf16>
    tpu.vector_store %arg5[%c0_6, %c0_7], %8 {strides = array<i32>} : memref<128x128xbf16, #tpu.memory_space<vmem>>, vector<128x128xbf16>,
    return
  }
  func.func @transform_0(%arg0: i32, %arg1: i32) -> (i32, i32) {
    %c0_i32 = arith.constant 0 : i32
    %c0_i32_0 = arith.constant 0 : i32
    return %arg0, %c0_i32 : i32, i32
  }
  func.func @transform_1(%arg0: i32, %arg1: i32) -> (i32, i32) {
    %c0_i32 = arith.constant 0 : i32
    %c0_i32_0 = arith.constant 0 : i32
    return %c0_i32, %arg1 : i32, i32
  }
  func.func @transform_2(%arg0: i32, %arg1: i32) -> (i32, i32) {
    %c0_i32 = arith.constant 0 : i32
    %c0_i32_0 = arith.constant 0 : i32
    return %c0_i32, %arg1 : i32, i32
  }
  func.func @transform_3(%arg0: i32, %arg1: i32) -> (i32, i32) {
    %c0_i32 = arith.constant 0 : i32
    return %arg0, %arg1 : i32, i32
  }
}

</mosaic_0001>

<bundles_post_ra>
// kernel: tpu_custom_call.1
= control target key start
LH: loop header
LB: loop body
LE: loop exit
PB: predicated region body
PF: predicated region fallthrough
CT: control target
= control target key end

     0   :  { %8 = vsyncpa [#allocation3], 0  ;;  %s1284_s0 = inlined_call_operand.vmem [shape: bf16[512,147], index: 0, kind: input, shape index: {}]   ;;  %s1285_s1 = inlined_call_operand.vmem [shape: bf16[147,128], index: 1, kind: input, shape index: {}]   ;;  %s1286_s2 = inlined_call_operand.vmem [shape: f32[1,128], index: 2, kind: input, shape index: {}]   ;;  %s1287_s3 = inlined_call_operand.hbm [shape: bf16[512,128], index: 3, kind: output, shape index: {}]  }
   0x1   :  { %10 = vsyncpa [#allocation3 + $0x1], 0  ;;  %s1079_s12 = smov 0   ;;  %s1081_s13 = smov 0  }
   0x2   :  { %s1083_s14 = smov 0   ;;  %s1085_s15 = smov 0  }
   0x3   :  { %s1087_s16 = smov 0   ;;  %s1089_s17 = smov 0  }
   0x4 LB: > { %s731_s18 = sadd.s32 4294967295, %s1052_s17   ;;  %s732_s19 = sadd.s32 4294967294, %s1052_s17   ;;  %s1052_s17 = sphi %s1089_s17, %s16_s17   ;;  %s1048_s16 = sphi %s1087_s16, %s1294_s16   ;;  %s1044_s15 = sphi %s1085_s15, %s1293_s15   ;;  %s1040_s14 = sphi %s1083_s14, %s1292_s14   ;;  %s1036_s13 = sphi %s1081_s13, %s1291_s13   ;;  %s1032_s12 = sphi %s1079_s12, %s1290_s12  }
   0x5   : > { %s28_s20 = sadd.s32 1, %s1048_s16  ;;  %s115_s21 = sadd.s32 1, %s1040_s14 }
   0x6   : > { %p30_p0 = scmp.ge.s32.totalorder %s28_s20, 4  ;;  %p125_p1 = scmp.ne.s32.totalorder %s1040_s14, %s1036_s13 }
   0x7   : > { %p126_p2 = scmp.eq.s32.totalorder %s731_s18, 3  ;;  %p131_p3 = scmp.ne.s32.totalorder %s1036_s13, %s1032_s12 }
   0x8   : > { %s1296_s20 = smov (%p30_p0, %s28_s20), 0  ;;  %p132_p5 = scmp.eq.s32.totalorder %s732_s19, 3 }
   0x9   : > { %p1119_p4 = por %p126_p2, %p125_p1  ;;  %s110_s23 = ssub.s32 %s1048_s16, %s1296_s20 }
   0xa   : > { %p737_p6 = scmp.ge.s32.totalorder %s1052_s17, 1  ;;  %p113_p7 = scmp.eq.s32.totalorder %s110_s23, 0 }
   0xb   : > { %p1126_p8 = por %p132_p5, %p131_p3  ;;  %p173_p9 = scmp.lt.s32.totalorder %s1052_s17, 5 }
   0xc   : > { %s1132_s25 = scalar_select %p113_p7, %s1040_s14, %s115_s21  }
   0xd   : > { %p174_p10 = pnand %p737_p6, %p173_p9 }
   0xe   : > { %s739_s5 = sshll.u32 (!%p174_p10), %s1044_s15, 4  ;;  %s202_s9 = sand.u32 (!%p174_p10), 1, %s1036_s13  }
   0xf   : > { %177 = sbr.rel (%p174_p10) target bundleno = 302 (0x12e), region = 32  ;;  %p206_p11 = scmp.lt.s32.totalorder (!%p174_p10), %s739_s5, 63 }
  0x10   : > { %s738_s10 = sshll.u32 (!%p174_p10), %s202_s9, 6  ;;  %s815_s18 = sshll.u32 (!%p174_p10), %s1044_s15, 10 }
  0x11   : > { %s1231_s26 = scalar_lea.hbm (!%p174_p10), %s1287_s3, %s815_s18  ;;  %s1239_s15 = scalar_lea.sflag (!%p174_p10), [#allocation3], %s202_s9 }
  0x12   : > { %s1056_s28 = smov (!%p174_p10), [#allocation2]  }
  0x13   : > { %s980_s29 = sshll.u32 (!%p174_p10), %s1056_s28, 4  ;;  %s981_s29 = int_to_ptr.vmem [resolvable:$false] %s980_s29 }
  0x14   : > { %v942_v0 = vld [vmem:[%s1285_s1 + $0x38] sm:$0xff]   ;;  %v1054_v1 = vmov 0   ;;  %v943_v2 = vld [vmem:[%s1285_s1 + $0x30] sm:$0xff]   ;;  %v944_v3 = vld [vmem:[%s1285_s1 + $0x28] sm:$0xff]   ;;  %s1298_s5 = smov (!%p206_p11, %s739_s5), 63  ;;  %vm392_vm0 = vcmask 154624  }
  0x15   : > { %424 = vmatprep.subr.bf16.mxu0 %v1054_v1  ;;  %863 = vmatprep.subr.bf16.mxu1 %v1054_v1  ;;  %v945_v4 = vld [vmem:[%s1285_s1 + $0x20] sm:$0xff]   ;;  %s798_s8 = sshll.u32 %s1298_s5, 3  ;;  %v946_v5 = vld [vmem:[%s1285_s1 + $0x18] sm:$0xff]   ;;  %v947_v8 = vld [vmem:[%s1285_s1 + $0x10] sm:$0xff]   ;;  %vm417_vm1 = vcmask 1040384   ;;  %vm418_vm2 = vcmask 1041408  }
  0x16   : > { %425 = vmatpush1.bf16.msra.mxu0 %v942_v0  ;;  %873 = vmatpush1.bf16.msra.mxu1 %v942_v0  ;;  %s1150_s11 = scalar_lea.vmem %s1284_s0, %s798_s8  ;;  %v948_v9 = vld [vmem:[%s1285_s1 + $0x8] sm:$0xff]   ;;  %v1055_v10 = vmov 65535   ;;  %v949_v12 = vld [vmem:[%s1285_s1] sm:$0xff]   ;;  %s982_s30 = scalar_lea.vmem %s981_s29, 2048 }
  0x17   : > { %426 = vmatprep.subr.bf16.mxu0 %v1054_v1  ;;  %864 = vmatprep.subr.bf16.mxu1 %v1054_v1  ;;  %v954_v6 = vld [vmem:[%s1150_s11 + $0x4] ss:$8 sps:$4 sm:$0xff]   ;;  %v419_v11 = vsel %vm417_vm1, 4294967295, %v1055_v10  ;;  %v950_v13 = vld [vmem:[%s1285_s1 + $0x48] ss:$0 sps:$4 sm:$0x33]  }
  0x18   : > { %v957_v7 = vld [vmem:[%s1150_s11 + $0x44] ss:$8 sps:$4 sm:$0xff]   ;;  %769 = vmatprep.mubr.msk.bf16.mxu0 %vm392_vm0, %v954_v6  ;;  %v420_v14 = vsel %vm418_vm2, %v419_v11, 0  ;;  %v952_v17 = vld [vmem:[%s1150_s11] ss:$8 sps:$4 sm:$0xff]  }
  0x19   : > { %773 = vmatprep.mubr.msk.bf16.mxu1 %vm392_vm0, %v957_v7  ;;  %v422_v15 = vand.u32 %v950_v13, %v420_v14  ;;  %v951_v16 = vld [vmem:[%s1285_s1 + $0x40] sm:$0xff]   ;;  %v958_v19 = vld [vmem:[%s1150_s11 + $0x14] ss:$8 sps:$4 sm:$0xff]   ;;  %v962_v21 = vld [vmem:[%s1150_s11 + $0x10] ss:$8 sps:$4 sm:$0xff]  }
  0x1a   : > { %427 = vmatpush1.bf16.msra.mxu0 %v943_v2  ;;  %874 = vmatpush1.bf16.msra.mxu1 %v943_v2  ;;  %v955_v18 = vld [vmem:[%s1150_s11 + $0x40] ss:$8 sps:$4 sm:$0xff]   ;;  %v960_v20 = vld [vmem:[%s1150_s11 + $0x54] ss:$8 sps:$4 sm:$0xff]   ;;  %v963_v22 = vld [vmem:[%s1150_s11 + $0x50] ss:$8 sps:$4 sm:$0xff]  }
  0x1b   : > { %428 = vmatprep.subr.bf16.mxu0 %v1054_v1  ;;  %865 = vmatprep.subr.bf16.mxu1 %v1054_v1  ;;  %v964_v23 = vld [vmem:[%s1150_s11 + $0x24] ss:$8 sps:$4 sm:$0xff]   ;;  %v968_v25 = vld [vmem:[%s1150_s11 + $0x20] ss:$8 sps:$4 sm:$0xff]   ;;  %v970_v27 = vld [vmem:[%s1150_s11 + $0x34] ss:$8 sps:$4 sm:$0xff]  }
  0x1c   : > { %v966_v24 = vld [vmem:[%s1150_s11 + $0x64] ss:$8 sps:$4 sm:$0xff]   ;;  %v969_v26 = vld [vmem:[%s1150_s11 + $0x60] ss:$8 sps:$4 sm:$0xff]   ;;  %v972_v28 = vld [vmem:[%s1150_s11 + $0x74] ss:$8 sps:$4 sm:$0xff]  }
  0x1d   : > { %v974_v29 = vld [vmem:[%s1150_s11 + $0x30] ss:$8 sps:$4 sm:$0xff]   ;;  %v1197_v31 = vld [vmem:[%s1286_s2] ss:$0 sm:$0xff] }
  0x1e   : > { %429 = vmatpush1.bf16.msra.mxu0 %v944_v3  ;;  %875 = vmatpush1.bf16.msra.mxu1 %v944_v3  ;;  %v975_v30 = vld [vmem:[%s1150_s11 + $0x70] ss:$8 sps:$4 sm:$0xff]   ;;  %s1206_s11 = scalar_lea.vmem [#allocation2], %s738_s10 }
  0x1f   : > { %430 = vmatprep.subr.bf16.mxu0 %v1054_v1  ;;  %866 = vmatprep.subr.bf16.mxu1 %v1054_v1  ;;  %s632_s19 = sshll.u32 %s1206_s11, 4  ;;  %s1233_s19 = int_to_ptr.vmem [resolvable:$true] %s632_s19 }
  0x20   : > { %s976_s27 = scalar_lea.vmem %s1233_s19, 1024  ;;  %p983_p1 = scmp.lt.s32.totalorder %s1233_s19, %s981_s29 }
  0x21   : > { %p977_p12 = scmp.ne.s32.totalorder %s1233_s19, %s976_s27  ;;  %p984_p2 = scmp.lt.s32.totalorder %s982_s30, %s976_s27 }
  0x22   : > { %431 = vmatpush1.bf16.msra.mxu0 %v945_v4  ;;  %876 = vmatpush1.bf16.msra.mxu1 %v945_v4 }
  0x23   : > { %432 = vmatprep.subr.bf16.mxu0 %v1054_v1  ;;  %867 = vmatprep.subr.bf16.mxu1 %v1054_v1  ;;  %p978_p13 = pnand %p977_p12, %p1119_p4  ;;  %p985_p3 = por %p984_p2, %p983_p1 }
  0x25   : > { %p979_p0 = pneg %p978_p13 }
  0x26   : > { %433 = vmatpush1.bf16.msra.mxu0 %v946_v5  ;;  %877 = vmatpush1.bf16.msra.mxu1 %v946_v5 }
  0x27   : > { %434 = vmatprep.subr.bf16.mxu0 %v1054_v1  ;;  %868 = vmatprep.subr.bf16.mxu1 %v1054_v1  ;;  %p986_p5 = pnand %p985_p3, %p979_p0 }
  0x2a   : > { %435 = vmatpush1.bf16.msra.mxu0 %v947_v8  ;;  %878 = vmatpush1.bf16.msra.mxu1 %v947_v8 }
  0x2b   : > { %436 = vmatprep.subr.bf16.mxu0 %v1054_v1  ;;  %869 = vmatprep.subr.bf16.mxu1 %v1054_v1 }
  0x2e   : > { %437 = vmatpush1.bf16.msra.mxu0 %v948_v9  ;;  %879 = vmatpush1.bf16.msra.mxu1 %v948_v9 }
  0x2f   : > { %438 = vmatprep.subr.bf16.mxu0 %v1054_v1  ;;  %870 = vmatprep.subr.bf16.mxu1 %v1054_v1 }
  0x32   : > { %439 = vmatpush1.bf16.msra.mxu0 %v949_v12  ;;  %880 = vmatpush1.bf16.msra.mxu1 %v949_v12 }
  0x33   : > { %452 = vmatprep.subr.bf16.mxu0 %v1054_v1  ;;  %871 = vmatprep.subr.bf16.mxu1 %v1054_v1 }
  0x36   : > { %453 = vmatpush2.bf16.msra.mxu0 %v422_v15  ;;  %881 = vmatpush2.bf16.msra.mxu1 %v422_v15 }
  0x37   : > { %454 = vmatprep.subr.bf16.mxu0 %v1054_v1  ;;  %872 = vmatprep.subr.bf16.mxu1 %v1054_v1 }
  0x3a   : > { %455 = vmatpush2.bf16.msra.mxu0 %v951_v16  ;;  %882 = vmatpush2.bf16.msra.mxu1 %v951_v16 }
  0x3d   : > { %457 = vmatmul.mubr.bf16.vlgmr.msra.gmra.mxu0 %v952_v17  ;;  %489 = vmatmul.mubr.bf16.vlgmr.msra.gmra.mxu1 %v955_v18 }
  0x3e   : > { %770 = vmatprep.mubr.msk.bf16.mxu0 %vm392_vm0, %v958_v19  ;;  %774 = vmatprep.mubr.msk.bf16.mxu1 %vm392_vm0, %v960_v20 }
  0x45   : > { %465 = vmatmul.mubr.bf16.gmra.mxu0 %v962_v21  ;;  %497 = vmatmul.mubr.bf16.gmra.mxu1 %v963_v22 }
  0x46   : > { %771 = vmatprep.mubr.msk.bf16.mxu0 %vm392_vm0, %v964_v23  ;;  %775 = vmatprep.mubr.msk.bf16.mxu1 %vm392_vm0, %v966_v24 }
  0x4d   : > { %473 = vmatmul.mubr.bf16.gmra.mxu0 %v968_v25  ;;  %505 = vmatmul.mubr.bf16.gmra.mxu1 %v969_v26 }
  0x4e   : > { %772 = vmatprep.mubr.msk.bf16.mxu0 %vm392_vm0, %v970_v27  ;;  %776 = vmatprep.mubr.msk.bf16.mxu1 %vm392_vm0, %v972_v28 }
  0x55   : > { %481 = vmatmul.mubr.bf16.gmra.mxu0 %v974_v29  ;;  %513 = vmatmul.mubr.bf16.gmra.mxu1 %v975_v30 }
  0xfd   : > { %v458_v32 = vpop.f32.mrf.mxu0  ;;  %v490_v33 = vpop.f32.mrf.mxu1 }
  0xfe   : > { %v459_v36 = vadd.f32 %v1197_v31, %v458_v32  ;;  %v491_v37 = vadd.f32 %v1197_v31, %v490_v33 }
  0xff   : > { %v460_v34 = vpop.f32.mrf.mxu0  ;;  %v492_v35 = vpop.f32.mrf.mxu1 }
 0x100   : > { %v521_v44 = vmax.f32 %v459_v36, 0.0  ;;  %v529_v45 = vmax.f32 %v491_v37, 0.0 }
 0x101   : > { %v461_v38 = vpop.f32.mrf.mxu0  ;;  %v493_v39 = vpop.f32.mrf.mxu1 }
 0x102   : > { %v462_v40 = vadd.f32 %v1197_v31, %v461_v38  ;;  %v494_v41 = vadd.f32 %v1197_v31, %v493_v39 }
 0x103   : > { %v463_v42 = vpop.f32.mrf.mxu0  ;;  %v495_v43 = vpop.f32.mrf.mxu1 }
 0x104   : > { %v522_v46 = vmax.f32 %v462_v40, 0.0  ;;  %v530_v47 = vmax.f32 %v494_v41, 0.0 }
 0x105   : > { %v466_v48 = vpop.f32.mrf.mxu0  ;;  %v498_v49 = vpop.f32.mrf.mxu1 }
 0x106   : > { %v819_v50 = vpack.c.bf16 %v522_v46, %v521_v44  ;;  %v839_v51 = vpack.c.bf16 %v530_v47, %v529_v45  ;;  %v467_v54 = vadd.f32 %v1197_v31, %v466_v48  ;;  %v499_v55 = vadd.f32 %v1197_v31, %v498_v49 }
 0x107   : > { %v468_v52 = vpop.f32.mrf.mxu0  ;;  %v500_v53 = vpop.f32.mrf.mxu1 }
 0x108   : > { %820 = vst [vmem:[%s1206_s11] sm:$0xff] %v819_v50   ;;  %859 = vst [vmem:[%s1206_s11 + $0x20] sm:$0xff] %v839_v51   ;;  %v523_v62 = vmax.f32 %v467_v54, 0.0  ;;  %v531_v63 = vmax.f32 %v499_v55, 0.0 }
 0x109   : > { %v469_v56 = vpop.f32.mrf.mxu0  ;;  %v501_v57 = vpop.f32.mrf.mxu1 }
 0x10a   : > { %v470_v58 = vadd.f32 %v1197_v31, %v469_v56  ;;  %v502_v59 = vadd.f32 %v1197_v31, %v501_v57 }
 0x10b   : > { %v471_v60 = vpop.f32.mrf.mxu0  ;;  %v503_v61 = vpop.f32.mrf.mxu1 }
 0x10c   : > { %v524_v0 = vmax.f32 %v470_v58, 0.0  ;;  %v532_v1 = vmax.f32 %v502_v59, 0.0 }
 0x10d   : > { %v474_v2 = vpop.f32.mrf.mxu0  ;;  %v506_v3 = vpop.f32.mrf.mxu1 }
 0x10e   : > { %v824_v4 = vpack.c.bf16 %v524_v0, %v523_v62  ;;  %v844_v5 = vpack.c.bf16 %v532_v1, %v531_v63  ;;  %v475_v8 = vadd.f32 %v1197_v31, %v474_v2  ;;  %v507_v9 = vadd.f32 %v1197_v31, %v506_v3 }
 0x10f   : > { %v476_v6 = vpop.f32.mrf.mxu0  ;;  %v508_v7 = vpop.f32.mrf.mxu1 }
 0x110   : > { %856 = vst [vmem:[%s1206_s11 + $0x8] sm:$0xff] %v824_v4   ;;  %860 = vst [vmem:[%s1206_s11 + $0x28] sm:$0xff] %v844_v5   ;;  %v525_v16 = vmax.f32 %v475_v8, 0.0  ;;  %v533_v17 = vmax.f32 %v507_v9, 0.0 }
 0x111   : > { %v477_v10 = vpop.f32.mrf.mxu0  ;;  %v509_v11 = vpop.f32.mrf.mxu1 }
 0x112   : > { %v478_v12 = vadd.f32 %v1197_v31, %v477_v10  ;;  %v510_v13 = vadd.f32 %v1197_v31, %v509_v11 }
 0x113   : > { %v479_v14 = vpop.f32.mrf.mxu0  ;;  %v511_v15 = vpop.f32.mrf.mxu1 }
 0x114   : > { %v526_v18 = vmax.f32 %v478_v12, 0.0  ;;  %v534_v19 = vmax.f32 %v510_v13, 0.0 }
 0x115   : > { %v482_v20 = vpop.f32.mrf.mxu0  ;;  %v514_v21 = vpop.f32.mrf.mxu1 }
 0x116   : > { %v829_v22 = vpack.c.bf16 %v526_v18, %v525_v16  ;;  %v849_v23 = vpack.c.bf16 %v534_v19, %v533_v17  ;;  %v483_v26 = vadd.f32 %v1197_v31, %v482_v20  ;;  %v515_v27 = vadd.f32 %v1197_v31, %v514_v21 }
 0x117   : > { %v484_v24 = vpop.f32.mrf.mxu0  ;;  %v516_v25 = vpop.f32.mrf.mxu1 }
 0x118   : > { %857 = vst [vmem:[%s1206_s11 + $0x10] sm:$0xff] %v829_v22   ;;  %861 = vst [vmem:[%s1206_s11 + $0x30] sm:$0xff] %v849_v23   ;;  %v527_v35 = vmax.f32 %v483_v26, 0.0  ;;  %v535_v36 = vmax.f32 %v515_v27, 0.0 }
 0x119   : > { %v485_v28 = vpop.f32.mrf.mxu0  ;;  %v517_v29 = vpop.f32.mrf.mxu1 }
 0x11a   : > { %v486_v30 = vadd.f32 %v1197_v31, %v485_v28  ;;  %v518_v32 = vadd.f32 %v1197_v31, %v517_v29 }
 0x11b   : > { %v487_v33 = vpop.f32.mrf.mxu0  ;;  %v519_v34 = vpop.f32.mrf.mxu1 }
 0x11c   : > { %v528_v37 = vmax.f32 %v486_v30, 0.0  ;;  %v536_v38 = vmax.f32 %v518_v32, 0.0 }
 0x11e   : > { %v834_v31 = vpack.c.bf16 %v528_v37, %v527_v35  ;;  %v854_v39 = vpack.c.bf16 %v536_v38, %v535_v36 }
 0x120   : > { %858 = vst [vmem:[%s1206_s11 + $0x18] sm:$0xff] %v834_v31   ;;  %862 = vst [vmem:[%s1206_s11 + $0x38] sm:$0xff] %v854_v39  }
 0x121   : > { %989 = shalt.err (!%p986_p5)
}
 0x122   : > { %s990_s4 = scalar_lea.hbm %s1231_s26, 1024  ;;  %s994_s7 = scalar_lea.hbm %s1287_s3, 4096 }
 0x123   : > { %p991_p6 = scmp.ne.s32.totalorder %s1231_s26, %s990_s4  ;;  %p995_p10 = scmp.lt.s32.totalorder %s1231_s26, %s1287_s3 }
 0x124   : > { %p996_p11 = scmp.lt.s32.totalorder %s994_s7, %s990_s4 }
 0x125   : > { %p992_p7 = pnand %p991_p6, %p1119_p4 }
 0x126   : > { %p997_p12 = por %p996_p11, %p995_p10 }
 0x127   : > { %p993_p9 = pneg %p992_p7 }
 0x129   : > { %p998_p13 = pnand %p997_p12, %p993_p9 }
 0x12b   : > { %1001 = shalt.err (!%p998_p13)
}
 0x12c   : > { %s1057_s10 = smov 64   ;;  %s1058_s11 = smov 4  }
 0x12d   : > { %883 = dma.vmem_to_hbm [thread:$0]  (%p1119_p4), %s1233_s19, 1024, %s1231_s26, %s1239_s15, %s1057_s10, %s1057_s10, %s1058_s11  }
 0x12e PF: > { %p889_p0 = scmp.ge.s32.totalorder %s1052_s17, 2  ;;  %s647_s18 = sand.u32 1, %s1032_s12  }
 0x12f   : > { %s648_s21 = scalar_lea.sflag [#allocation3], %s647_s18 }
 0x130   : > { %p886_p1 = pnand %p889_p0, %p1126_p8 }
 0x132   : > { %p887_p2 = pneg %p886_p1 }
 0x134   : > { %1027 = dma.done.wait (%p887_p2), %s648_s21, 1024  }
 0x135   : > { %1029 = vsyncadd (%p887_p2), %s648_s21, 4294966272  ;;  %s16_s17 = sadd.s32 1, %s1052_s17   ;;  %s1290_s12 = smov %s1036_s13 }
 0x136   : > { %p13_p3 = scmp.ge.s32.totalorder %s16_s17, 6   ;;  %s1291_s13 = smov %s1040_s14 }
 0x137   : > { %s1292_s14 = smov %s1132_s25  ;;  %s1293_s15 = smov %s1048_s16 }
 0x138   : > { %s1294_s16 = smov %s1296_s20  ;;  %15 = sbr.rel (!%p13_p3) target bundleno = 4 (0x4), region = 73 }
 0x13d   :  { %653 = vsyncpa [#allocation3], 1 }
 0x13e   :  { %655 = vsyncpa [#allocation3 + $0x1], 1 }

</bundles_post_ra>
